<compile_context>
chip_gen: v7x
topology: tpu7x:2x2x1
jax: 0.10.0
libtpu: 0.0.40
codegen_flags: <defaults>
</compile_context>

<pallas_src>
import jax
import jax.numpy as jnp
from jax.experimental import pallas as pl
from jax.experimental.pallas import tpu as pltpu


def _round_up(x: int, m: int) -> int:
    return ((x + m - 1) // m) * m


def classifier_kernel(x_ref, w1_ref, b1_ref, w2_ref, b2_ref, o_ref, acc_ref):
    """Tiles: x (Bt, tk) bf16, w1 (tk, Fp) bf16, b1 (1, Fp) f32,
    w2 (Fp, Cp) bf16, b2 (1, Cp) f32, o (Bt, Cp) f32, acc (Bt, Fp) f32."""
    k = pl.program_id(1)

    @pl.when(k == 0)
    def _init():
        # Fold the first-layer bias into the accumulator init: one broadcast
        # total instead of a broadcast+add every K step.
        acc_ref[...] = jnp.broadcast_to(b1_ref[...], acc_ref.shape)

    # base: partial Linear(Din, F) over this K slice, f32 accumulation on MXU.
    acc_ref[...] += jnp.dot(x_ref[...], w1_ref[...],
                            preferred_element_type=jnp.float32)

    @pl.when(k == pl.num_programs(1) - 1)
    def _finalize():
        feat = jnp.maximum(acc_ref[...], 0.0)          # base ReLU
        # dropout(p=0.5): identity in eval mode.
        # TODO(synk): training-mode dropout would use pltpu.prng_seed +
        # pltpu.prng_random_bits with 1/(1-p) survivor scaling.
        out = jnp.dot(feat.astype(w2_ref.dtype), w2_ref[...],
                      preferred_element_type=jnp.float32)
        o_ref[...] = (out + b2_ref[...]).astype(o_ref.dtype)


def classifier_forward(x_nchw, w1, b1, w2, b2, *, block_b=256, block_k=512):
    """Flatten NCHW input, run base Linear+ReLU, dropout (identity), logits."""
    B = x_nchw.shape[0]
    x_flat = x_nchw.reshape(B, -1).astype(jnp.float32)   # row-major, like torch .view(B, -1)
    Din, F = w1.shape
    _, C = w2.shape

    # ---- pad to sublane/lane-friendly shapes (zero padding is exact) ----
    B_pad = _round_up(B, 8)
    Bt = block_b if B_pad >= block_b else B_pad
    B_pad = _round_up(B_pad, Bt)

    Din_pad = _round_up(Din, 128)
    tk = block_k if Din_pad > block_k else Din_pad
    Din_pad = _round_up(Din_pad, tk)

    F_pad = _round_up(F, 128)
    C_pad = _round_up(C, 128)

    x_p = jnp.zeros((B_pad, Din_pad), jnp.bfloat16).at[:B, :Din].set(
        x_flat.astype(jnp.bfloat16))
    w1_p = jnp.zeros((Din_pad, F_pad), jnp.bfloat16).at[:Din, :F].set(
        w1.astype(jnp.bfloat16))
    b1_p = jnp.zeros((1, F_pad), jnp.float32).at[:, :F].set(
        b1.reshape(1, F).astype(jnp.float32))
    w2_p = jnp.zeros((F_pad, C_pad), jnp.bfloat16).at[:F, :C].set(
        w2.astype(jnp.bfloat16))
    b2_p = jnp.zeros((1, C_pad), jnp.float32).at[:, :C].set(
        b2.reshape(1, C).astype(jnp.float32))

    grid = (B_pad // Bt, Din_pad // tk)   # (batch tiles, K-reduction steps)

    cost = pl.CostEstimate(
        flops=2 * B_pad * Din_pad * F_pad + 2 * B_pad * F_pad * C_pad,
        transcendentals=0,
        bytes_accessed=(x_p.size * 2 + w1_p.size * 2 + w2_p.size * 2
                        + b1_p.size * 4 + b2_p.size * 4 + B_pad * C_pad * 4),
    )

    out_pad = pl.pallas_call(
        classifier_kernel,
        out_shape=jax.ShapeDtypeStruct((B_pad, C_pad), jnp.float32),
        grid_spec=pltpu.PrefetchScalarGridSpec(
            num_scalar_prefetch=0,
            grid=grid,
            in_specs=[
                pl.BlockSpec((Bt, tk), lambda i, k: (i, k)),        # x
                pl.BlockSpec((tk, F_pad), lambda i, k: (k, 0)),     # w1
                pl.BlockSpec((1, F_pad), lambda i, k: (0, 0)),      # b1
                pl.BlockSpec((F_pad, C_pad), lambda i, k: (0, 0)),  # w2
                pl.BlockSpec((1, C_pad), lambda i, k: (0, 0)),      # b2
            ],
            out_specs=pl.BlockSpec((Bt, C_pad), lambda i, k: (i, 0)),
            scratch_shapes=[pltpu.VMEM((Bt, F_pad), jnp.float32)],
        ),
        compiler_params=pltpu.CompilerParams(
            dimension_semantics=("parallel", "arbitrary")),
        cost_estimate=cost,
    )(x_p, w1_p, b1_p, w2_p, b2_p)

    return out_pad[:B, :C]


def reference_forward(x_nchw, w1, b1, w2, b2):
    x = x_nchw.reshape(x_nchw.shape[0], -1)
    feat = jnp.maximum(x @ w1 + b1, 0.0)
    return feat @ w2 + b2


if __name__ == "__main__":
    # Small shapes: batch=2, channels=4, spatial=16x16 -> Din=1024
    B, Cin, H, W = 2, 4, 16, 16
    feature_dim = 32
    num_classes = 8
    Din = Cin * H * W

    key = jax.random.PRNGKey(0)
    kx, kw1, kb1, kw2, kb2 = jax.random.split(key, 5)

    x = jax.random.normal(kx, (B, Cin, H, W), dtype=jnp.float32)
    w1 = jax.random.normal(kw1, (Din, feature_dim), dtype=jnp.float32) * (1.0 / Din) ** 0.5
    b1 = jax.random.normal(kb1, (feature_dim,), dtype=jnp.float32) * 0.01
    w2 = jax.random.normal(kw2, (feature_dim, num_classes), dtype=jnp.float32) * (1.0 / feature_dim) ** 0.5
    b2 = jax.random.normal(kb2, (num_classes,), dtype=jnp.float32) * 0.01

    out = classifier_forward(x, w1, b1, w2, b2)
    out = jax.block_until_ready(out)

    ref = reference_forward(x, w1, b1, w2, b2)
    assert out.shape == (B, num_classes), out.shape
    # bf16 inputs (f32 accumulation) -> loosen tolerance vs the f32 reference.
    assert jnp.allclose(out, ref, atol=5e-2, rtol=5e-2), "mismatch vs JAX reference"

    print("KERNEL_OK")
</pallas_src>

<mosaic_0001>
module attributes {stable_mosaic.version = 11 : i64} {
  func.func @classifier_kernel(%arg0: i32, %arg1: i32, %arg2: memref<8x512xbf16, #tpu.memory_space<vmem>>, %arg3: memref<512x128xbf16, #tpu.memory_space<vmem>>, %arg4: memref<1x128xf32, #tpu.memory_space<vmem>>, %arg5: memref<128x128xbf16, #tpu.memory_space<vmem>>, %arg6: memref<1x128xf32, #tpu.memory_space<vmem>>, %arg7: memref<8x128xf32, #tpu.memory_space<vmem>>, %arg8: memref<8x128xf32, #tpu.memory_space<vmem>>) attributes {dimension_semantics = [#tpu.dimension_semantics<parallel>, #tpu.dimension_semantics<arbitrary>], iteration_bounds = array<i64: 1, 2>, scalar_prefetch = 0 : i64, scratch_operands = 1 : i64, tpu.core_type = #tpu.core_type<tc>, window_params = [{transform_indices = @transform_0, window_bounds = array<i64: 8, 512>}, {transform_indices = @transform_1, window_bounds = array<i64: 512, 128>}, {pipeline_mode = #tpu.pipeline_mode<synchronous>, transform_indices = @transform_2, window_bounds = array<i64: 1, 128>}, {pipeline_mode = #tpu.pipeline_mode<synchronous>, transform_indices = @transform_3, window_bounds = array<i64: 128, 128>}, {pipeline_mode = #tpu.pipeline_mode<synchronous>, transform_indices = @transform_4, window_bounds = array<i64: 1, 128>}, {transform_indices = @transform_5, window_bounds = array<i64: 8, 128>}]} {
    %c0_i32 = arith.constant 0 : i32
    %0 = arith.cmpi eq, %arg1, %c0_i32 : i32
    %1 = arith.extui %0 : i1 to i32
    %c0_i32_0 = arith.constant 0 : i32
    %2 = arith.cmpi ne, %1, %c0_i32_0 : i32
    scf.if %2 {
      %c0_9 = arith.constant 0 : index
      %c0_10 = arith.constant 0 : index
      %12 = vector.load %arg4[%c0_9, %c0_10] : memref<1x128xf32, #tpu.memory_space<vmem>>, vector<1x128xf32>
      %13 = vector.shape_cast %12 : vector<1x128xf32> to vector<1x128xf32>
      %14 = vector.broadcast %13 : vector<1x128xf32> to vector<8x128xf32>
      %c0_11 = arith.constant 0 : index
      %c0_12 = arith.constant 0 : index
      %15 = vector.load %arg8[%c0_11, %c0_12] : memref<8x128xf32, #tpu.memory_space<vmem>>, vector<8x128xf32>
      tpu.vector_store %arg8[%c0_11, %c0_12], %14 {strides = array<i32>} : memref<8x128xf32, #tpu.memory_space<vmem>>, vector<8x128xf32>,
    } else {
    }
    %c0 = arith.constant 0 : index
    %c0_1 = arith.constant 0 : index
    %3 = vector.load %arg8[%c0, %c0_1] : memref<8x128xf32, #tpu.memory_space<vmem>>, vector<8x128xf32>
    %c0_2 = arith.constant 0 : index
    %c0_3 = arith.constant 0 : index
    %4 = vector.load %arg2[%c0_2, %c0_3] : memref<8x512xbf16, #tpu.memory_space<vmem>>, vector<8x512xbf16>
    %c0_4 = arith.constant 0 : index
    %c0_5 = arith.constant 0 : index
    %5 = vector.load %arg3[%c0_4, %c0_5] : memref<512x128xbf16, #tpu.memory_space<vmem>>, vector<512x128xbf16>
    %cst = arith.constant dense<0.000000e+00> : vector<8x128xf32>
    %6 = tpu.matmul %4, %5, %cst {dimension_numbers = #tpu.dot_dimension_numbers<[1], [0], [0], [1], [0, 0, 1, 1], [], []>} : vector<8x512xbf16>, vector<512x128xbf16>, vector<8x128xf32> -> vector<8x128xf32>
    %7 = arith.addf %3, %6 : vector<8x128xf32>
    %c0_6 = arith.constant 0 : index
    %c0_7 = arith.constant 0 : index
    %8 = vector.load %arg8[%c0_6, %c0_7] : memref<8x128xf32, #tpu.memory_space<vmem>>, vector<8x128xf32>
    tpu.vector_store %arg8[%c0_6, %c0_7], %7 {strides = array<i32>} : memref<8x128xf32, #tpu.memory_space<vmem>>, vector<8x128xf32>,
    %c1_i32 = arith.constant 1 : i32
    %9 = arith.cmpi eq, %arg1, %c1_i32 : i32
    %10 = arith.extui %9 : i1 to i32
    %c0_i32_8 = arith.constant 0 : i32
    %11 = arith.cmpi ne, %10, %c0_i32_8 : i32
    scf.if %11 {
      %c0_9 = arith.constant 0 : index
      %c0_10 = arith.constant 0 : index
      %12 = vector.load %arg8[%c0_9, %c0_10] : memref<8x128xf32, #tpu.memory_space<vmem>>, vector<8x128xf32>
      %cst_11 = arith.constant 0.000000e+00 : f32
      %13 = vector.broadcast %cst_11 : f32 to vector<8x128xf32>
      %14 = arith.maximumf %12, %13 : vector<8x128xf32>
      %15 = arith.truncf %14 : vector<8x128xf32> to vector<8x128xbf16>
      %c0_12 = arith.constant 0 : index
      %c0_13 = arith.constant 0 : index
      %16 = vector.load %arg5[%c0_12, %c0_13] : memref<128x128xbf16, #tpu.memory_space<vmem>>, vector<128x128xbf16>
      %cst_14 = arith.constant dense<0.000000e+00> : vector<8x128xf32>
      %17 = tpu.matmul %15, %16, %cst_14 {dimension_numbers = #tpu.dot_dimension_numbers<[1], [0], [0], [1], [0, 0, 1, 1], [], []>} : vector<8x128xbf16>, vector<128x128xbf16>, vector<8x128xf32> -> vector<8x128xf32>
      %c0_15 = arith.constant 0 : index
      %c0_16 = arith.constant 0 : index
      %18 = vector.load %arg6[%c0_15, %c0_16] : memref<1x128xf32, #tpu.memory_space<vmem>>, vector<1x128xf32>
      %19 = vector.broadcast %18 : vector<1x128xf32> to vector<8x128xf32>
      %20 = arith.addf %17, %19 : vector<8x128xf32>
      %c0_17 = arith.constant 0 : index
      %c0_18 = arith.constant 0 : index
      %21 = vector.load %arg7[%c0_17, %c0_18] : memref<8x128xf32, #tpu.memory_space<vmem>>, vector<8x128xf32>
      tpu.vector_store %arg7[%c0_17, %c0_18], %20 {strides = array<i32>} : memref<8x128xf32, #tpu.memory_space<vmem>>, vector<8x128xf32>,
    } else {
    }
    return
  }
  func.func @transform_0(%arg0: i32, %arg1: i32) -> (i32, i32) {
    %c0_i32 = arith.constant 0 : i32
    return %arg0, %arg1 : i32, i32
  }
  func.func @transform_1(%arg0: i32, %arg1: i32) -> (i32, i32) {
    %c0_i32 = arith.constant 0 : i32
    %c0_i32_0 = arith.constant 0 : i32
    return %arg1, %c0_i32 : i32, i32
  }
  func.func @transform_2(%arg0: i32, %arg1: i32) -> (i32, i32) {
    %c0_i32 = arith.constant 0 : i32
    %c0_i32_0 = arith.constant 0 : i32
    %c0_i32_1 = arith.constant 0 : i32
    return %c0_i32, %c0_i32_0 : i32, i32
  }
  func.func @transform_3(%arg0: i32, %arg1: i32) -> (i32, i32) {
    %c0_i32 = arith.constant 0 : i32
    %c0_i32_0 = arith.constant 0 : i32
    %c0_i32_1 = arith.constant 0 : i32
    return %c0_i32, %c0_i32_0 : i32, i32
  }
  func.func @transform_4(%arg0: i32, %arg1: i32) -> (i32, i32) {
    %c0_i32 = arith.constant 0 : i32
    %c0_i32_0 = arith.constant 0 : i32
    %c0_i32_1 = arith.constant 0 : i32
    return %c0_i32, %c0_i32_0 : i32, i32
  }
  func.func @transform_5(%arg0: i32, %arg1: i32) -> (i32, i32) {
    %c0_i32 = arith.constant 0 : i32
    %c0_i32_0 = arith.constant 0 : i32
    return %arg0, %c0_i32 : i32, i32
  }
}

</mosaic_0001>

<bundles_post_ra>
// kernel: tpu_custom_call.1
= control target key start
LH: loop header
LB: loop body
LE: loop exit
PB: predicated region body
PF: predicated region fallthrough
CT: control target
= control target key end

     0   :  { %10 = vsyncpa [#allocation4], 0  ;;  %s1652_s0 = inlined_call_operand.hbm [shape: bf16[8,1024], index: 0, kind: input, shape index: {}]   ;;  %s1653_s1 = inlined_call_operand.hbm [shape: bf16[1024,128], index: 1, kind: input, shape index: {}]   ;;  %s1654_s2 = inlined_call_operand.vmem [shape: f32[1,128], index: 2, kind: input, shape index: {}]   ;;  %s1655_s3 = inlined_call_operand.hbm [shape: bf16[128,128], index: 3, kind: input, shape index: {}]   ;;  %s1656_s4 = inlined_call_operand.vmem [shape: f32[1,128], index: 4, kind: input, shape index: {}]   ;;  %s1657_s5 = inlined_call_operand.hbm [shape: f32[8,128], index: 5, kind: output, shape index: {}]  }
   0x1   :  { %12 = vsyncpa [#allocation4 + $0x1], 0 }
   0x2   :  { %13 = vsyncpa [#allocation7], 0 }
   0x3   :  { %15 = vsyncpa [#allocation7 + $0x1], 0 }
   0x4   :  { %16 = vsyncpa [#allocation5], 0  ;;  %s1381_s18 = smov 0   ;;  %s1383_s19 = smov 0  }
   0x5   :  { %s1385_s20 = smov 0   ;;  %s1387_s21 = smov 0  }
   0x6   :  { %s1389_s22 = smov 0   ;;  %s1391_s23 = smov 0  }
   0x7 LB: > { %s1410_s24 = sadd.s32 4294967295, %s1341_s23   ;;  %p56_p0 = scmp.ne.s32.totalorder %s1325_s19, %s1321_s18  ;;  %s1341_s23 = sphi %s1391_s23, %s22_s23   ;;  %s1337_s22 = sphi %s1389_s22, %s1677_s22   ;;  %s1333_s21 = sphi %s1387_s21, %s1676_s21   ;;  %s1329_s20 = sphi %s1385_s20, %s1675_s20   ;;  %s1325_s19 = sphi %s1383_s19, %s1674_s19   ;;  %s1321_s18 = sphi %s1381_s18, %s1673_s18  }
   0x8   : > { %p1658_p1 = scmp.eq.s32.totalorder %s1410_s24, 0  ;;  %p899_p2 = scmp.ge.s32.totalorder %s1341_s23, 1 }
   0x9   : > { %p182_p3 = scmp.lt.s32.totalorder %s1341_s23, 3  ;;  %s1343_s27 = smov [#allocation8]  }
   0xa   : > { %p1418_p4 = por %p1658_p1, %p56_p0  ;;  %s197_s28 = sshll.u32 %s1343_s27, 4  ;;  %s198_s28 = int_to_ptr.vmem [resolvable:$true] %s197_s28 }
   0xb   : > { %p1422_p5 = pnand %p899_p2, %p182_p3  ;;  %s31_s30 = sadd.s32 1, %s1337_s22 }
   0xc   : > { %s1663_s25 = scalar_select %p1418_p4, 1, 0 }
   0xd   : > { %s1664_s26 = scalar_select %p1422_p5, 1, 0 }
   0xe   : > { %p1051_p6 = pneg %p1422_p5  ;;  %s1165_s8 = scalar_lea.hbm %s1655_s3, 1024 }
   0xf   : > { %p1166_p8 = scmp.ne.s32.totalorder %s1655_s3, %s1165_s8  ;;  %p1172_p12 = scmp.lt.u32.totalorder %s1165_s8, %s1655_s3 }
  0x10   : > { %p1430_p7 = pnand %p1051_p6, %p1658_p1 }
  0x12   : > { %p1167_p9 = pneg %p1430_p7 }
  0x14   : > { %p1168_p10 = pnand %p1167_p9, %p1166_p8 }
  0x16   : > { %p1169_p11 = pneg %p1168_p10 }
  0x18   : > { %p1174_p13 = pnand %p1172_p12, %p1169_p11 }
  0x1a   : > { %1177 = shalt.err (!%p1174_p13)
}
  0x1b   : > { %s1178_s13 = scalar_lea.vmem %s198_s28, 1024  ;;  %p1186_p6 = scmp.lt.s32.totalorder %s198_s28, %s198_s28 }
  0x1c   : > { %p1179_p0 = scmp.ne.s32.totalorder %s198_s28, %s1178_s13  ;;  %p1187_p1 = scmp.lt.s32.totalorder %s1178_s13, %s1178_s13 }
  0x1e   : > { %p1181_p2 = pnand %p1179_p0, %p1167_p9  ;;  %p1188_p4 = por %p1187_p1, %p1186_p6 }
  0x20   : > { %p1182_p3 = pneg %p1181_p2 }
  0x22   : > { %p1189_p5 = pnand %p1188_p4, %p1182_p3 }
  0x24   : > { %1192 = shalt.err (!%p1189_p5)
}
  0x25   : > { %s1661_s14 = smov 64   ;;  %s1662_s15 = smov 4  }
  0x26   : > { %1054 = dma.hbm_to_vmem [thread:$0]  (!%p1430_p7), %s1655_s3, 1024, %s198_s28, [#allocation7], %s1661_s14, %s1661_s14, %s1662_s15  }
  0x27   : > { %p32_p1 = scmp.ge.s32.totalorder %s31_s30, 2  ;;  %s43_s18 = sadd.s32 1, %s1329_s20 }
  0x28   : > { %p50_p4 = scmp.ne.s32.totalorder %s1329_s20, %s1325_s19  ;;  %p51_p5 = scmp.eq.s32.totalorder %s1341_s23, 0 }
  0x29   : > { %s1679_s30 = smov (%p32_p1, %s31_s30), 0  ;;  %p1063_p9 = scmp.lt.s32.totalorder %s1341_s23, 2 }
  0x2a   : > { %p52_p8 = por %p51_p5, %p50_p4  ;;  %s39_s27 = ssub.s32 %s1337_s22, %s1679_s30 }
  0x2b   : > { %s1464_s6 = sand.u32 1, %s1329_s20   ;;  %p41_p10 = scmp.eq.s32.totalorder %s39_s27, 0 }
  0x2c   : > { %s902_s29 = sshll.u32 %s1464_s6, 4  ;;  %s964_s7 = sshll.u32 %s1337_s22, 8 }
  0x2d   : > { %s1469_s8 = scalar_select %p41_p10, %s1329_s20, %s43_s18  }
  0x2e   : > { %s1474_s10 = scalar_lea.hbm %s1652_s0, %s964_s7  ;;  %s218_s11 = scalar_lea.vmem [#allocation3], %s902_s29 }
  0x2f   : > { %s228_s12 = sshll.u32 %s218_s11, 4  ;;  %p1476_p7 = pnand %p1063_p9, %p52_p8  ;;  %s1480_s12 = int_to_ptr.vmem [resolvable:$true] %s228_s12 }
  0x30   : > { %s905_s16 = sshll.u32 %s1464_s6, 8  ;;  %s215_s17 = scalar_lea.sflag [#allocation4], %s1464_s6 }
  0x31   : > { %s1193_s18 = scalar_lea.hbm %s1474_s10, 256  ;;  %p1195_p12 = pneg %p1476_p7 }
  0x32   : > { %p1194_p11 = scmp.ne.s32.totalorder %s1474_s10, %s1193_s18  ;;  %s1198_s7 = scalar_lea.hbm %s1652_s0, 512 }
  0x33   : > { %p1199_p2 = scmp.lt.u32.totalorder %s1474_s10, %s1652_s0  ;;  %p1200_p3 = scmp.lt.u32.totalorder %s1198_s7, %s1193_s18 }
  0x34   : > { %p1196_p13 = pnand %p1195_p12, %p1194_p11  ;;  %p1202_p1 = scmp.lt.u32.totalorder %s1193_s18, %s1474_s10 }
  0x35   : > { %p1201_p6 = por %p1200_p3, %p1199_p2 }
  0x36   : > { %p1197_p0 = pneg %p1196_p13 }
  0x37   : > { %p1203_p4 = por %p1202_p1, %p1201_p6 }
  0x39   : > { %p1204_p5 = pnand %p1203_p4, %p1197_p0 }
  0x3b   : > { %1207 = shalt.err (!%p1204_p5)
}
  0x3c   : > { %s1208_s11 = scalar_lea.vmem %s1480_s12, 256  ;;  %s1346_s27 = smov [#allocation3]  }
  0x3d   : > { %p1209_p8 = scmp.ne.s32.totalorder %s1480_s12, %s1208_s11  ;;  %s1213_s29 = sshll.u32 %s1346_s27, 4  ;;  %s1214_s29 = int_to_ptr.vmem [resolvable:$false] %s1213_s29 }
  0x3e   : > { %s1215_s28 = scalar_lea.vmem %s1214_s29, 512  ;;  %p1216_p11 = scmp.lt.s32.totalorder %s1480_s12, %s1214_s29 }
  0x3f   : > { %p1211_p9 = pnand %p1209_p8, %p1195_p12  ;;  %p1217_p13 = scmp.lt.s32.totalorder %s1215_s28, %s1208_s11 }
  0x41   : > { %p1212_p10 = pneg %p1211_p9  ;;  %p1218_p2 = por %p1217_p13, %p1216_p11 }
  0x43   : > { %p1219_p3 = pnand %p1218_p2, %p1212_p10 }
  0x45   : > { %1222 = shalt.err (!%p1219_p3)
}
  0x46   : > { %1058 = dma.hbm_to_vmem [thread:$0]  (!%p1476_p7), %s1474_s10, 256, %s1480_s12, %s215_s17  }
  0x47   : > { %s965_s18 = sshll.u32 %s1337_s22, 12  ;;  %s239_s7 = scalar_lea.vmem [#allocation6], %s905_s16 }
  0x48   : > { %s246_s9 = sshll.u32 %s239_s7, 4  ;;  %s235_s27 = sand.u32 1, %s1341_s23   ;;  %s1512_s9 = int_to_ptr.vmem [resolvable:$true] %s246_s9 }
  0x49   : > { %s1518_s28 = scalar_lea.hbm %s1653_s1, %s965_s18  ;;  %s1520_s14 = scalar_lea.sflag [#allocation7], %s235_s27 }
  0x4a   : > { %s1223_s15 = scalar_lea.hbm %s1518_s28, 4096  ;;  %s1228_s12 = scalar_lea.hbm %s1653_s1, 8192 }
  0x4b   : > { %p1224_p0 = scmp.ne.s32.totalorder %s1518_s28, %s1223_s15  ;;  %p1229_p4 = scmp.lt.u32.totalorder %s1518_s28, %s1653_s1 }
  0x4c   : > { %p1230_p5 = scmp.lt.u32.totalorder %s1228_s12, %s1223_s15  ;;  %p1232_p9 = scmp.lt.u32.totalorder %s1223_s15, %s1518_s28 }
  0x4d   : > { %p1226_p6 = pnand %p1224_p0, %p1195_p12 }
  0x4e   : > { %p1231_p8 = por %p1230_p5, %p1229_p4 }
  0x4f   : > { %p1227_p1 = pneg %p1226_p6 }
  0x50   : > { %p1233_p10 = por %p1232_p9, %p1231_p8 }
  0x52   : > { %p1234_p11 = pnand %p1233_p10, %p1227_p1 }
  0x54   : > { %1237 = shalt.err (!%p1234_p11)
}
  0x55   : > { %s1238_s18 = scalar_lea.vmem %s1512_s9, 4096  ;;  %s1347_s7 = smov [#allocation6]  }
  0x56   : > { %p1239_p13 = scmp.ne.s32.totalorder %s1512_s9, %s1238_s18  ;;  %s1243_s27 = sshll.u32 %s1347_s7, 4  ;;  %s1244_s27 = int_to_ptr.vmem [resolvable:$false] %s1243_s27 }
  0x57   : > { %s1245_s11 = scalar_lea.vmem %s1244_s27, 8192  ;;  %p1246_p0 = scmp.lt.s32.totalorder %s1512_s9, %s1244_s27 }
  0x58   : > { %p1241_p2 = pnand %p1239_p13, %p1195_p12  ;;  %p1247_p6 = scmp.lt.s32.totalorder %s1245_s11, %s1238_s18 }
  0x5a   : > { %p1242_p3 = pneg %p1241_p2  ;;  %p1248_p4 = por %p1247_p6, %p1246_p0 }
  0x5c   : > { %p1249_p5 = pnand %p1248_p4, %p1242_p3 }
  0x5e   : > { %1252 = shalt.err (!%p1249_p5)
}
  0x5f   : > { %s1667_s15 = smov 4   ;;  %s1668_s29 = smov 64  }
  0x60   : > { %1061 = dma.hbm_to_vmem [thread:$0]  (!%p1476_p7), %s1518_s28, 4096, %s1512_s9, %s1520_s14, %s1668_s29, %s1668_s29, %s1667_s15  }
  0x61   : > { %p1669_p12 = scmp.ne.s32.totalorder %s1664_s26, 0 }
  0x62   : > { %s260_s6 = sand.u32 (!%p1669_p12), 1, %s1325_s19   ;;  %p1670_p1 = scmp.ne.s32.totalorder (!%p1669_p12), %s1663_s25, 0 }
  0x63   : > { %258 = sbr.rel (%p1669_p12) target bundleno = 628 (0x274), region = 40  ;;  %s909_s10 = sshll.u32 (!%p1669_p12), %s260_s6, 4 }
  0x64   : > { %s261_s12 = scalar_lea.sflag (!%p1669_p12), [#allocation4], %s260_s6  ;;  %s1552_s16 = scalar_lea.vmem (!%p1669_p12), [#allocation3], %s909_s10 }
  0x6a   : > { %1304 = dma.done.wait (%p1670_p1), %s261_s12, 256  }
  0x6b   : > { %1306 = vsyncadd (%p1670_p1), %s261_s12, 4294967040  ;;  %s269_s13 = sand.u32 1, %s1410_s24   ;;  %s910_s17 = sshll.u32 %s260_s6, 8 }
  0x6c   : > { %s270_s14 = scalar_lea.sflag [#allocation7], %s269_s13  ;;  %s1559_s9 = scalar_lea.vmem [#allocation6], %s910_s17 }
  0x6d   : > { %1308 = dma.done.wait (%p1670_p1), %s270_s14, 4096  }
  0x6e   : > { %1310 = vsyncadd (%p1670_p1), %s270_s14, 4294963200  ;;  %p1671_p7 = scmp.eq.s32.totalorder %s1410_s24, 0 }
  0x70   : > { %1312 = dma.done.wait (%p1671_p7), [#allocation7], 1024   ;;  %p1672_p8 = pmov %p1671_p7 }
  0x71   : > { %p912_p9 = scmp.ne.s32.totalorder %s1333_s21, 0 }
  0x72   : > { %1314 = vsyncadd (%p1672_p8), [#allocation7], 4294966272  ;;  %v913_v0 = vld [vmem:[%s1654_s2] ss:$0 sm:$0xff] (!%p912_p9) }
  0x73   : > { %310 = sbr.rel (%p912_p9) target bundleno = 122 (0x7a), region = 56  ;;  %318 = vst [vmem:[#allocation2] sm:$0xff] (!%p912_p9), %v913_v0 }
  0x7a PF: > { %v1121_v1 = vld [vmem:[%s1559_s9 + $0x40] sm:$0xff]   ;;  %v1125_v5 = vld [vmem:[%s1559_s9 + $0x48] sm:$0xff]   ;;  %v1129_v9 = vld [vmem:[%s1559_s9 + $0x50] sm:$0xff]   ;;  %p950_p10 = scmp.ne.s32.totalorder %s1333_s21, 1 }
  0x7b   : > { %v1122_v2 = vld [vmem:[%s1559_s9 + $0xc0] sm:$0xff]   ;;  %966 = vmatprep.subr.bf16.mxu0 %v1121_v1  ;;  %v1126_v6 = vld [vmem:[%s1559_s9 + $0xc8] sm:$0xff]   ;;  %v1130_v10 = vld [vmem:[%s1559_s9 + $0xd0] sm:$0xff]   ;;  %v1348_v53 = vmov (!%p950_p10), 0.0   ;;  %vm1349_vm0 = vmmov (!%p950_p10), 0  }
  0x7c   : > { %v1123_v3 = vld [vmem:[%s1559_s9] sm:$0xff]   ;;  %988 = vmatprep.subr.bf16.mxu1 %v1122_v2  ;;  %v1127_v7 = vld [vmem:[%s1559_s9 + $0x8] sm:$0xff]   ;;  %v1131_v11 = vld [vmem:[%s1559_s9 + $0x10] sm:$0xff]  }
  0x7d   : > { %v1124_v4 = vld [vmem:[%s1559_s9 + $0x80] sm:$0xff]   ;;  %967 = vmatpush3.bf16.msra.mxu0 %v1123_v3  ;;  %v1128_v8 = vld [vmem:[%s1559_s9 + $0x88] sm:$0xff]   ;;  %v1132_v12 = vld [vmem:[%s1559_s9 + $0x90] sm:$0xff]  }
  0x7e   : > { %989 = vmatpush3.bf16.msra.mxu1 %v1124_v4  ;;  %968 = vmatprep.subr.bf16.mxu0 %v1125_v5  ;;  %v1133_v13 = vld [vmem:[%s1559_s9 + $0x58] sm:$0xff]   ;;  %v1137_v17 = vld [vmem:[%s1559_s9 + $0x60] sm:$0xff]   ;;  %v1141_v21 = vld [vmem:[%s1559_s9 + $0x68] sm:$0xff]  }
  0x7f   : > { %990 = vmatprep.subr.bf16.mxu1 %v1126_v6  ;;  %v1134_v14 = vld [vmem:[%s1559_s9 + $0xd8] sm:$0xff]   ;;  %v1138_v18 = vld [vmem:[%s1559_s9 + $0xe0] sm:$0xff]   ;;  %v1142_v22 = vld [vmem:[%s1559_s9 + $0xe8] sm:$0xff]  }
  0x80   : > { %v1135_v15 = vld [vmem:[%s1559_s9 + $0x18] sm:$0xff]   ;;  %v1139_v19 = vld [vmem:[%s1559_s9 + $0x20] sm:$0xff]   ;;  %v1143_v23 = vld [vmem:[%s1559_s9 + $0x28] sm:$0xff]  }
  0x81   : > { %969 = vmatpush3.bf16.msra.mxu0 %v1127_v7  ;;  %v1136_v16 = vld [vmem:[%s1559_s9 + $0x98] sm:$0xff]   ;;  %v1140_v20 = vld [vmem:[%s1559_s9 + $0xa0] sm:$0xff]   ;;  %v1144_v24 = vld [vmem:[%s1559_s9 + $0xa8] sm:$0xff]  }
  0x82   : > { %991 = vmatpush3.bf16.msra.mxu1 %v1128_v8  ;;  %970 = vmatprep.subr.bf16.mxu0 %v1129_v9  ;;  %v1145_v25 = vld [vmem:[%s1559_s9 + $0x70] sm:$0xff]   ;;  %v1149_v29 = vld [vmem:[%s1559_s9 + $0x78] sm:$0xff]   ;;  %v1157_v52 = vld [vmem:[#allocation8] sm:$0xff] (!%p950_p10)  }
  0x83   : > { %992 = vmatprep.subr.bf16.mxu1 %v1130_v10  ;;  %v1146_v26 = vld [vmem:[%s1559_s9 + $0xf0] sm:$0xff]   ;;  %v1150_v30 = vld [vmem:[%s1559_s9 + $0xf8] sm:$0xff]   ;;  %v1158_v54 = vld [vmem:[#allocation8 + $0x8] sm:$0xff] (!%p950_p10)  }
  0x84   : > { %v1147_v27 = vld [vmem:[%s1559_s9 + $0x30] sm:$0xff]   ;;  %v1151_v31 = vld [vmem:[%s1559_s9 + $0x38] sm:$0xff]   ;;  %v1161_v57 = vld [vmem:[#allocation8 + $0x20] sm:$0xff] (!%p950_p10)  }
  0x85   : > { %971 = vmatpush3.bf16.msra.mxu0 %v1131_v11  ;;  %v1148_v28 = vld [vmem:[%s1559_s9 + $0xb0] sm:$0xff]   ;;  %v1152_v32 = vld [vmem:[%s1559_s9 + $0xb8] sm:$0xff]   ;;  %v1162_v58 = vld [vmem:[#allocation8 + $0x28] sm:$0xff] (!%p950_p10)  }
  0x86   : > { %993 = vmatpush3.bf16.msra.mxu1 %v1132_v12  ;;  %972 = vmatprep.subr.bf16.mxu0 %v1133_v13  ;;  %v320_v33 = vld [vmem:[%s1552_s16] sm:$0xff]  ;;  %v321_v34 = vld [vmem:[%s1552_s16 + $0x8] sm:$0xff] }
  0x87   : > { %994 = vmatprep.subr.bf16.mxu1 %v1134_v14  ;;  %v914_v35 = vcombine.low %v320_v33, %v320_v33  ;;  %v915_v36 = vcombine.high %v320_v33, %v320_v33  ;;  %v916_v37 = vcombine.low %v321_v34, %v321_v34  ;;  %v917_v38 = vcombine.high %v321_v34, %v321_v34  ;;  %v319_v47 = vld [vmem:[#allocation2] sm:$0xff]  ;;  %v1159_v55 = vld [vmem:[#allocation8 + $0x10] sm:$0xff] (!%p950_p10)  }
  0x88   : > { %v1160_v56 = vld [vmem:[#allocation8 + $0x18] sm:$0xff] (!%p950_p10)   ;;  %v1163_v59 = vld [vmem:[#allocation8 + $0x30] sm:$0xff] (!%p950_p10)  }
  0x89   : > { %973 = vmatpush3.bf16.msra.mxu0 %v1135_v15  ;;  %624 = vmatprep.mubr.bf16.mxu0 %v915_v36  ;;  %v1164_v62 = vld [vmem:[#allocation8 + $0x38] sm:$0xff] (!%p950_p10)  }
  0x8a   : > { %995 = vmatpush3.bf16.msra.mxu1 %v1136_v16  ;;  %974 = vmatprep.subr.bf16.mxu0 %v1137_v17  ;;  %v951_v0 = vld [vmem:[%s1656_s4] ss:$0 sm:$0xff] (!%p950_p10) }
  0x8b   : > { %996 = vmatprep.subr.bf16.mxu1 %v1138_v18  ;;  %664 = vmatprep.mubr.bf16.mxu1 %v917_v38 }
  0x8d   : > { %975 = vmatpush3.bf16.msra.mxu0 %v1139_v19 }
  0x8e   : > { %997 = vmatpush3.bf16.msra.mxu1 %v1140_v20  ;;  %976 = vmatprep.subr.bf16.mxu0 %v1141_v21 }
  0x8f   : > { %998 = vmatprep.subr.bf16.mxu1 %v1142_v22 }
  0x91   : > { %977 = vmatpush3.bf16.msra.mxu0 %v1143_v23 }
  0x92   : > { %999 = vmatpush3.bf16.msra.mxu1 %v1144_v24  ;;  %978 = vmatprep.subr.bf16.mxu0 %v1145_v25 }
  0x93   : > { %1000 = vmatprep.subr.bf16.mxu1 %v1146_v26 }
  0x95   : > { %979 = vmatpush3.bf16.msra.mxu0 %v1147_v27 }
  0x96   : > { %1001 = vmatpush3.bf16.msra.mxu1 %v1148_v28  ;;  %980 = vmatprep.subr.bf16.mxu0 %v1149_v29 }
  0x97   : > { %1002 = vmatprep.subr.bf16.mxu1 %v1150_v30 }
  0x99   : > { %981 = vmatpush3.bf16.msra.mxu0 %v1151_v31 }
  0x9a   : > { %1003 = vmatpush3.bf16.msra.mxu1 %v1152_v32  ;;  %1019 = vmatprep.subr.bf16.mxu0 (!%p950_p10), %v1348_v53 }
  0x9c   : > { %625 = vmatmul.mubr.bf16.vlgmr.msra.gmra.mrb[0].mxu0 %v914_v35 }
  0x9d   : > { %665 = vmatmul.mubr.bf16.vlgmr.msra.gmra.mrb[0].mxu1 %v916_v37  ;;  %1020 = vmatpush3.bf16.msra.mxu0 (!%p950_p10), %v1157_v52 }
  0x9e   : > { %1035 = vmatprep.mubr.msk.bf16.mxu0 (!%p950_p10), %vm1349_vm0, %v1348_v53  ;;  %1021 = vmatprep.subr.bf16.mxu0 (!%p950_p10), %v1348_v53 }
  0xa1   : > { %1022 = vmatpush3.bf16.msra.mxu0 (!%p950_p10), %v1158_v54 }
  0xa2   : > { %1023 = vmatprep.subr.bf16.mxu0 (!%p950_p10), %v1348_v53 }
  0xa5   : > { %1024 = vmatpush3.bf16.msra.mxu0 (!%p950_p10), %v1159_v55 }
  0xa6   : > { %1025 = vmatprep.subr.bf16.mxu0 (!%p950_p10), %v1348_v53 }
  0xa9   : > { %1026 = vmatpush3.bf16.msra.mxu0 (!%p950_p10), %v1160_v56 }
  0xaa   : > { %1027 = vmatprep.subr.bf16.mxu0 (!%p950_p10), %v1348_v53 }
  0xad   : > { %1028 = vmatpush3.bf16.msra.mxu0 (!%p950_p10), %v1161_v57 }
  0xae   : > { %1029 = vmatprep.subr.bf16.mxu0 (!%p950_p10), %v1348_v53 }
  0xb1   : > { %1030 = vmatpush3.bf16.msra.mxu0 (!%p950_p10), %v1162_v58 }
  0xb2   : > { %1031 = vmatprep.subr.bf16.mxu0 (!%p950_p10), %v1348_v53 }
  0xb5   : > { %1032 = vmatpush3.bf16.msra.mxu0 (!%p950_p10), %v1163_v59 }
  0xb6   : > { %1033 = vmatprep.subr.bf16.mxu0 (!%p950_p10), %v1348_v53 }
  0xb9   : > { %1034 = vmatpush3.bf16.msra.mxu0 (!%p950_p10), %v1164_v62 }
 0x16f   : > { %v982_v39 = vpop.f32.mrb[0].mxu0 }
 0x170   : > { %v1004_v40 = vpop.f32.mrb[0].mxu1  ;;  %v983_v41 = vpop.f32.mrb[1].mxu0 }
 0x171   : > { %v1005_v42 = vpop.f32.mrb[1].mxu1  ;;  %v984_v43 = vadd.f32 %v983_v41, %v982_v39  ;;  %v985_v45 = vpop.f32.mrb[2].mxu0 }
 0x172   : > { %v1006_v44 = vadd.f32 %v1005_v42, %v1004_v40  ;;  %v1007_v46 = vpop.f32.mrb[2].mxu1  ;;  %v986_v48 = vpop.f32.mrb[3].mxu0  ;;  %677 = sbr.rel (%p950_p10) target bundleno = 603 (0x25b), region = 60 }
 0x173   : > { %v1008_v49 = vpop.f32.mrb[3].mxu1 }
 0x174   : > { %v667_v50 = vadd.f32 %v1006_v44, %v984_v43 }
 0x176   : > { %v672_v51 = vadd.f32 %v667_v50, %v319_v47 }
 0x178   : > { %673 = vst [vmem:[#allocation2] sm:$0xff] %v672_v51 }
 0x17f   : > { %v678_v60 = vld [vmem:[#allocation2] sm:$0xff] }
 0x180   : > { %v679_v61 = vmax.f32 %v678_v60, 0.0 }
 0x182   : > { %v680_v63 = vpack.c.bf16 %v679_v61, %v679_v61 }
 0x184   : > { %1036 = vmatmul.mubr.bf16.vlgmr.msra.gmra.mrb[0].mxu0 %v680_v63 }
 0x257   : > { %v786_v1 = vpop.f32.mrb[0].mxu0 }
 0x258   : > { %v787_v2 = vadd.f32 %v951_v0, %v786_v1  ;;  %v1037_v3 = vpop.f32.mrb[1].mxu0 }
 0x259   : > { %v789_v4 = vpop.f32.mrb[2].mxu0 }
 0x25a   : > { %792 = vst [vmem:[#allocation9] sm:$0xff] %v787_v2  ;;  %v1038_v5 = vpop.f32.mrb[3].mxu0 }
 0x25b PF: > { %p1065_p11 = scmp.eq.s32.totalorder %s1410_s24, 1  ;;  %s1350_s18 = smov [#allocation9]  }
 0x25c   : > { %s802_s7 = sshll.u32 %s1350_s18, 4  ;;  %s803_s7 = int_to_ptr.vmem [resolvable:$true] %s802_s7 }
 0x25d   : > { %s1253_s27 = scalar_lea.vmem %s803_s7, 128  ;;  %p1260_p0 = scmp.lt.s32.totalorder %s803_s7, %s803_s7 }
 0x25e   : > { %p1254_p13 = scmp.ne.s32.totalorder %s803_s7, %s1253_s27  ;;  %p1261_p6 = scmp.lt.s32.totalorder %s1253_s27, %s1253_s27 }
 0x260   : > { %p1255_p2 = pnand %p1254_p13, %p1065_p11  ;;  %p1262_p4 = por %p1261_p6, %p1260_p0 }
 0x262   : > { %p1256_p3 = pneg %p1255_p2 }
 0x264   : > { %p1263_p5 = pnand %p1262_p4, %p1256_p3 }
 0x266   : > { %1266 = shalt.err (!%p1263_p5)
}
 0x267   : > { %s1267_s29 = scalar_lea.hbm %s1657_s5, 128 }
 0x268   : > { %p1268_p12 = scmp.ne.s32.totalorder %s1657_s5, %s1267_s29  ;;  %p1273_p8 = scmp.lt.u32.totalorder %s1267_s29, %s1657_s5 }
 0x26a   : > { %p1269_p1 = pnand %p1268_p12, %p1065_p11 }
 0x26c   : > { %p1270_p7 = pneg %p1269_p1 }
 0x26e   : > { %p1275_p9 = pnand %p1273_p8, %p1270_p7 }
 0x270   : > { %1278 = shalt.err (!%p1275_p9)
}
 0x271   : > { %1048 = dma.vmem_to_hbm [thread:$0]  (%p1065_p11), %s803_s7, 128, %s1657_s5, [#allocation5]  }
 0x272   : > { %1316 = dma.done.wait (%p1065_p11), [#allocation5], 128  }
 0x273   : > { %1318 = vsyncadd (%p1065_p11), [#allocation5], 4294967168 }
 0x274 PF: > { %s22_s23 = sadd.s32 1, %s1341_s23   ;;  %s1673_s18 = smov %s1325_s19 }
 0x275   : > { %p19_p10 = scmp.ge.s32.totalorder %s22_s23, 4   ;;  %s1674_s19 = smov %s1329_s20 }
 0x276   : > { %s1675_s20 = smov %s1469_s8  ;;  %s1676_s21 = smov %s1337_s22 }
 0x277   : > { %s1677_s22 = smov %s1679_s30  ;;  %21 = sbr.rel (!%p19_p10) target bundleno = 7 (0x7), region = 103 }
 0x27e   :  { %815 = vsyncpa [#allocation4], 1 }
 0x27f   :  { %817 = vsyncpa [#allocation4 + $0x1], 1 }
 0x280   :  { %818 = vsyncpa [#allocation7], 1 }
 0x281   :  { %820 = vsyncpa [#allocation7 + $0x1], 1 }
 0x282   :  { %821 = vsyncpa [#allocation5], 1 }
 0x283   :  { %823 = vsyncpa [#allocation5 + $0x1], 1 }

</bundles_post_ra>
